<compile_context>
chip_gen: v6e
topology: v6e:2x2x1
jax: 0.10.0
libtpu: 0.0.40
codegen_flags: <defaults>
</compile_context>

<pallas_src>
import functools

import jax
import jax.numpy as jnp
from jax import lax
from jax.experimental import pallas as pl
from jax.experimental.pallas import tpu as pltpu

EPS = 1e-6
_MIB = 1024 * 1024


def _round_up(n, m):
    return -(-n // m) * m


def _tile_size(hw):
    # 128-aligned tiles (lane / MXU native).  256 fills the 256x256 MXU tiles
    # on v6e/v7x once the spatial extent is large enough; 128 otherwise.
    return 256 if hw >= 256 else 128


def _vmem_limit(nbytes):
    # Explicit scoped-VMEM budget with headroom; never below the 32 MiB
    # default so small shapes keep the default (known-good) behavior.
    return int(max(32 * _MIB, min(int(nbytes * 1.5), 96 * _MIB)))


# ---------------------------------------------------------------------------
# Pass 1: GroupNorm normalize (precomputed scale/shift) + fused QKV 1x1 conv.
# ---------------------------------------------------------------------------
def gn_qkv_kernel(x_ref, scale_ref, shift_ref, wqkv_ref, bqkv_ref,
                  q_ref, kt_ref, v_ref):
    x = x_ref[0]                                            # (TM, C) f32
    C = x.shape[1]
    h = x * scale_ref[0] + shift_ref[0]                     # fused norm + affine
    # Fused QKV matmul: bf16 operands, f32 accumulation.  The attention scale
    # 1/sqrt(C) is already folded into the q columns / q bias.
    qkv = jnp.dot(h.astype(jnp.bfloat16), wqkv_ref[...],
                  preferred_element_type=jnp.float32) + bqkv_ref[...]   # (TM, 3C)
    q_ref[0] = qkv[:, :C].astype(jnp.bfloat16)                          # (TM, C)
    kt_ref[0, 0] = qkv[:, C:2 * C].T.astype(jnp.bfloat16)               # (C, TM)
    v_ref[0, 0] = qkv[:, 2 * C:].astype(jnp.bfloat16)                   # (TM, C)


# ---------------------------------------------------------------------------
# Pass 2: flash attention (online softmax over KV tiles) + proj_out + residual.
# ---------------------------------------------------------------------------
def flash_attn_proj_kernel(q_ref, kt_ref, v_ref, x_ref, wp_ref, bp_ref,
                           o_ref, m_sc, l_sc, acc_sc,
                           *, tk, hw, hw_p, kv_resident):
    ki = pl.program_id(2)

    @pl.when(ki == 0)
    def _():
        m_sc[...] = jnp.full_like(m_sc, -jnp.inf)
        l_sc[...] = jnp.zeros_like(l_sc)
        acc_sc[...] = jnp.zeros_like(acc_sc)

    kidx = ki if kv_resident else 0
    q = q_ref[0]                        # (TQ, C) bf16, attention scale pre-folded
    kt = kt_ref[0, kidx]                # (C, TK) bf16  (K stored pre-transposed)
    vt = v_ref[0, kidx]                 # (TK, C) bf16
    # logits: plain (TQ, C) @ (C, TK) MXU matmul, f32 accumulation
    s = jnp.dot(q, kt, preferred_element_type=jnp.float32)   # (TQ, TK)

    if hw_p != hw:                      # static: mask zero-padded key positions
        kpos = ki * tk + lax.broadcasted_iota(jnp.int32, s.shape, 1)
        s = jnp.where(kpos < hw, s, -1e30)

    m_prev = m_sc[...]
    m_new = jnp.maximum(m_prev, jnp.max(s, axis=-1, keepdims=True))
    alpha = jnp.exp(m_prev - m_new)
    p = jnp.exp(s - m_new)                                   # unnormalized probs
    l_sc[...] = alpha * l_sc[...] + jnp.sum(p, axis=-1, keepdims=True)
    acc_sc[...] = alpha * acc_sc[...] + jnp.dot(
        p.astype(jnp.bfloat16), vt, preferred_element_type=jnp.float32)
    m_sc[...] = m_new

    @pl.when(ki == pl.num_programs(2) - 1)
    def _():
        # Deferred softmax normalization: one EUP reciprocal + (TQ, C) multiply.
        inv_l = pl.reciprocal(l_sc[...], approx=True)
        attn_out = (acc_sc[...] * inv_l).astype(jnp.bfloat16)   # (TQ, C)
        proj = jnp.dot(attn_out, wp_ref[...],
                       preferred_element_type=jnp.float32) + bp_ref[...]
        o_ref[0] = x_ref[0] + proj


def attn_block(x_nchw, params, num_groups=32):
    """Forward pass of AttnBlock. x_nchw: (B, C, H, W) float32."""
    B, C, H, W = x_nchw.shape
    HW = H * W
    G = num_groups
    assert C % G == 0

    # glue: NCHW -> channel-last (B, HW, C)
    x = jnp.transpose(x_nchw, (0, 2, 3, 1)).reshape(B, HW, C).astype(jnp.float32)

    # ---- GroupNorm statistics: tiny per-batch reduction in plain XLA -------
    Cg = C // G
    xg = x.reshape(B, HW, G, Cg)
    mean_g = jnp.mean(xg, axis=(1, 3), keepdims=True)                    # (B,1,G,1)
    var_g = jnp.mean(jnp.square(xg - mean_g), axis=(1, 3), keepdims=True)
    rstd_g = lax.rsqrt(var_g + EPS)
    mean_c = jnp.broadcast_to(mean_g, (B, 1, G, Cg)).reshape(B, 1, C)
    rstd_c = jnp.broadcast_to(rstd_g, (B, 1, G, Cg)).reshape(B, 1, C)
    gamma = params["gamma"].reshape(1, 1, C).astype(jnp.float32)
    beta = params["beta"].reshape(1, 1, C).astype(jnp.float32)
    scale_c = (rstd_c * gamma).astype(jnp.float32)                        # (B,1,C)
    shift_c = (beta - mean_c * rstd_c * gamma).astype(jnp.float32)        # (B,1,C)

    # ---- fused QKV / proj weights (attention scale folded into q) ----------
    attn_scale = C ** (-0.5)
    wqkv = jnp.concatenate(
        [params["wq"].T * attn_scale, params["wk"].T, params["wv"].T],
        axis=1).astype(jnp.bfloat16)                                      # (C, 3C)
    bqkv = jnp.concatenate(
        [params["bq"] * attn_scale, params["bk"], params["bv"]],
        axis=0).reshape(1, 3 * C).astype(jnp.float32)                     # (1, 3C)
    wp_t = params["wp"].T.astype(jnp.bfloat16)                            # (C, C)
    bp = params["bp"].reshape(1, C).astype(jnp.float32)

    # ---- tiling: 128/256-aligned tiles, pad HW to a tile multiple ----------
    T = _tile_size(HW)
    TM = TQ = TK = T
    HW_p = _round_up(HW, T)
    x_p = jnp.pad(x, ((0, 0), (0, HW_p - HW), (0, 0))) if HW_p != HW else x
    nm = HW_p // TM
    nq, nk = HW_p // TQ, HW_p // TK

    # ---- pass 1: normalize + fused QKV projection, tiled over HW -----------
    p1_vmem = (
        2 * TM * C * 4                          # x tile (double-buffered)
        + 2 * 2 * C * 4                         # scale / shift
        + 2 * C * 3 * C * 2 + 2 * 3 * C * 4     # wqkv / bqkv (resident)
        + 3 * 2 * TM * C * 2                    # q / k^T / v output tiles
        + TM * 3 * C * 4 + TM * C * 4           # f32 temporaries
    )
    q, kt, v = pl.pallas_call(
        gn_qkv_kernel,
        out_shape=(
            jax.ShapeDtypeStruct((B, HW_p, C), jnp.bfloat16),      # q
            jax.ShapeDtypeStruct((B, nm, C, TM), jnp.bfloat16),    # k^T tiles
            jax.ShapeDtypeStruct((B, nm, TM, C), jnp.bfloat16),    # v tiles
        ),
        grid_spec=pltpu.PrefetchScalarGridSpec(
            num_scalar_prefetch=0,
            grid=(B, nm),
            in_specs=[
                pl.BlockSpec((1, TM, C), lambda b, m: (b, m, 0)),      # x
                pl.BlockSpec((1, 1, C), lambda b, m: (b, 0, 0)),       # scale
                pl.BlockSpec((1, 1, C), lambda b, m: (b, 0, 0)),       # shift
                pl.BlockSpec((C, 3 * C), lambda b, m: (0, 0)),         # wqkv
                pl.BlockSpec((1, 3 * C), lambda b, m: (0, 0)),         # bqkv
            ],
            out_specs=(
                pl.BlockSpec((1, TM, C), lambda b, m: (b, m, 0)),        # q
                pl.BlockSpec((1, 1, C, TM), lambda b, m: (b, m, 0, 0)),  # k^T
                pl.BlockSpec((1, 1, TM, C), lambda b, m: (b, m, 0, 0)),  # v
            ),
        ),
        compiler_params=pltpu.CompilerParams(
            dimension_semantics=("parallel", "parallel"),
            vmem_limit_bytes=_vmem_limit(p1_vmem)),
    )(x_p, scale_c, shift_c, wqkv, bqkv)

    # ---- pass 2: flash attention + proj_out + residual ---------------------
    # K/V residency: keep the full per-batch K^T and V in VMEM (constant
    # index_map, so fetched once per batch) when the double-buffered footprint
    # fits the budget; otherwise stream TK-sized tiles.
    kv_db_bytes = 2 * 2 * (HW_p * C * 2)        # K^T + V, double-buffered, bf16
    kv_resident = kv_db_bytes <= 20 * _MIB
    if kv_resident:
        kt_spec = pl.BlockSpec((1, nk, C, TK), lambda b, qi, ki: (b, 0, 0, 0))
        v_spec = pl.BlockSpec((1, nk, TK, C), lambda b, qi, ki: (b, 0, 0, 0))
        kv_vmem = kv_db_bytes
    else:
        kt_spec = pl.BlockSpec((1, 1, C, TK), lambda b, qi, ki: (b, ki, 0, 0))
        v_spec = pl.BlockSpec((1, 1, TK, C), lambda b, qi, ki: (b, ki, 0, 0))
        kv_vmem = 2 * 2 * (TK * C * 2)

    p2_vmem = (
        2 * TQ * C * 2                          # q tile
        + kv_vmem                               # K^T + V
        + 2 * TQ * C * 4 + 2 * TQ * C * 4       # x residual tile + out tile
        + 2 * C * C * 2 + 2 * C * 4             # wp / bp
        + TQ * C * 4 + 2 * TQ * 4               # scratch accumulators
        + 2 * TQ * TK * 4                       # logits / probs temporaries
    )

    kernel = functools.partial(flash_attn_proj_kernel,
                               tk=TK, hw=HW, hw_p=HW_p, kv_resident=kv_resident)
    out = pl.pallas_call(
        kernel,
        out_shape=jax.ShapeDtypeStruct((B, HW_p, C), jnp.float32),
        grid_spec=pltpu.PrefetchScalarGridSpec(
            num_scalar_prefetch=0,
            grid=(B, nq, nk),
            in_specs=[
                pl.BlockSpec((1, TQ, C), lambda b, qi, ki: (b, qi, 0)),   # q
                kt_spec,                                                  # k^T
                v_spec,                                                   # v
                pl.BlockSpec((1, TQ, C), lambda b, qi, ki: (b, qi, 0)),   # x
                pl.BlockSpec((C, C), lambda b, qi, ki: (0, 0)),           # wp_t
                pl.BlockSpec((1, C), lambda b, qi, ki: (0, 0)),           # bp
            ],
            out_specs=pl.BlockSpec((1, TQ, C), lambda b, qi, ki: (b, qi, 0)),
            scratch_shapes=[
                pltpu.VMEM((TQ, 1), jnp.float32),   # running max
                pltpu.VMEM((TQ, 1), jnp.float32),   # running denominator
                pltpu.VMEM((TQ, C), jnp.float32),   # running numerator
            ],
        ),
        compiler_params=pltpu.CompilerParams(
            dimension_semantics=("parallel", "parallel", "arbitrary"),
            vmem_limit_bytes=_vmem_limit(p2_vmem)),
    )(q, kt, v, x_p, wp_t, bp)

    # glue: drop HW padding, (B, HW, C) -> NCHW
    out = out[:, :HW, :]
    return jnp.transpose(out.reshape(B, H, W, C), (0, 3, 1, 2))


def attn_block_reference(x, params, num_groups=32):
    """Pure-JAX NCHW reference matching the PyTorch module semantics."""
    B, C, H, W = x.shape
    G = num_groups
    xg = x.reshape(B, G, C // G, H, W)
    mean = jnp.mean(xg, axis=(2, 3, 4), keepdims=True)
    var = jnp.mean((xg - mean) ** 2, axis=(2, 3, 4), keepdims=True)
    h = ((xg - mean) / jnp.sqrt(var + EPS)).reshape(B, C, H, W)
    h = h * params["gamma"].reshape(1, C, 1, 1) + params["beta"].reshape(1, C, 1, 1)

    def conv1x1(t, w, b):
        return jnp.einsum("oc,bchw->bohw", w, t) + b.reshape(1, C, 1, 1)

    q = conv1x1(h, params["wq"], params["bq"])
    k = conv1x1(h, params["wk"], params["bk"])
    v = conv1x1(h, params["wv"], params["bv"])
    q = q.reshape(B, C, H * W).transpose(0, 2, 1)       # (B, HW, C)
    k = k.reshape(B, C, H * W)                          # (B, C, HW)
    attn = jnp.einsum("bic,bcj->bij", q, k) * (C ** -0.5)
    attn = jax.nn.softmax(attn, axis=-1)
    v = v.reshape(B, C, H * W)
    out = jnp.einsum("bcj,bij->bci", v, attn).reshape(B, C, H, W)
    return x + conv1x1(out, params["wp"], params["bp"])


if __name__ == "__main__":
    B, C, H, W = 2, 64, 8, 8   # channels must be divisible by 32 (GroupNorm groups)
    key = jax.random.PRNGKey(0)
    keys = jax.random.split(key, 11)

    x = jax.random.normal(keys[0], (B, C, H, W), dtype=jnp.float32)
    params = {
        "gamma": 1.0 + 0.1 * jax.random.normal(keys[1], (C,), dtype=jnp.float32),
        "beta": 0.1 * jax.random.normal(keys[2], (C,), dtype=jnp.float32),
        "wq": jax.random.normal(keys[3], (C, C), dtype=jnp.float32) * (C ** -0.5),
        "bq": 0.05 * jax.random.normal(keys[4], (C,), dtype=jnp.float32),
        "wk": jax.random.normal(keys[5], (C, C), dtype=jnp.float32) * (C ** -0.5),
        "bk": 0.05 * jax.random.normal(keys[6], (C,), dtype=jnp.float32),
        "wv": jax.random.normal(keys[7], (C, C), dtype=jnp.float32) * (C ** -0.5),
        "bv": 0.05 * jax.random.normal(keys[8], (C,), dtype=jnp.float32),
        "wp": jax.random.normal(keys[9], (C, C), dtype=jnp.float32) * (C ** -0.5),
        "bp": 0.05 * jax.random.normal(keys[10], (C,), dtype=jnp.float32),
    }

    out = attn_block(x, params)
    out = jax.block_until_ready(out)

    ref = attn_block_reference(x, params)
    max_diff = float(jnp.max(jnp.abs(out - ref)))
    assert out.shape == (B, C, H, W)
    # bf16 MXU operands (f32 accumulation) -> relaxed tolerance vs f32 reference.
    assert max_diff < 5e-2, f"mismatch vs reference: {max_diff}"

    print("KERNEL_OK")
</pallas_src>

<mosaic_0001>
module attributes {stable_mosaic.version = 11 : i64} {
  func.func @gn_qkv_kernel(%arg0: i32, %arg1: i32, %arg2: memref<1x128x64xf32, #tpu.memory_space<vmem>>, %arg3: memref<1x1x64xf32, #tpu.memory_space<vmem>>, %arg4: memref<1x1x64xf32, #tpu.memory_space<vmem>>, %arg5: memref<64x192xbf16, #tpu.memory_space<vmem>>, %arg6: memref<1x192xf32, #tpu.memory_space<vmem>>, %arg7: memref<1x128x64xbf16, #tpu.memory_space<vmem>>, %arg8: memref<1x1x64x128xbf16, #tpu.memory_space<vmem>>, %arg9: memref<1x1x128x64xbf16, #tpu.memory_space<vmem>>) attributes {dimension_semantics = [#tpu.dimension_semantics<parallel>, #tpu.dimension_semantics<parallel>], iteration_bounds = array<i64: 2, 1>, scalar_prefetch = 0 : i64, scratch_operands = 0 : i64, tpu.core_type = #tpu.core_type<tc>, window_params = [{transform_indices = @transform_0, window_bounds = array<i64: 1, 128, 64>}, {transform_indices = @transform_1, window_bounds = array<i64: 1, 1, 64>}, {transform_indices = @transform_2, window_bounds = array<i64: 1, 1, 64>}, {pipeline_mode = #tpu.pipeline_mode<synchronous>, transform_indices = @transform_3, window_bounds = array<i64: 64, 192>}, {pipeline_mode = #tpu.pipeline_mode<synchronous>, transform_indices = @transform_4, window_bounds = array<i64: 1, 192>}, {transform_indices = @transform_5, window_bounds = array<i64: 1, 128, 64>}, {transform_indices = @transform_6, window_bounds = array<i64: 1, 1, 64, 128>}, {transform_indices = @transform_7, window_bounds = array<i64: 1, 1, 128, 64>}]} {
    %c0 = arith.constant 0 : index
    %c0_0 = arith.constant 0 : index
    %c0_1 = arith.constant 0 : index
    %0 = vector.load %arg2[%c0, %c0_0, %c0_1] : memref<1x128x64xf32, #tpu.memory_space<vmem>>, vector<1x128x64xf32>
    %1 = vector.shape_cast %0 : vector<1x128x64xf32> to vector<128x64xf32>
    %c0_2 = arith.constant 0 : index
    %c0_3 = arith.constant 0 : index
    %c0_4 = arith.constant 0 : index
    %2 = vector.load %arg3[%c0_2, %c0_3, %c0_4] : memref<1x1x64xf32, #tpu.memory_space<vmem>>, vector<1x1x64xf32>
    %3 = vector.shape_cast %2 : vector<1x1x64xf32> to vector<1x64xf32>
    %4 = vector.broadcast %3 : vector<1x64xf32> to vector<128x64xf32>
    %5 = arith.mulf %1, %4 : vector<128x64xf32>
    %c0_5 = arith.constant 0 : index
    %c0_6 = arith.constant 0 : index
    %c0_7 = arith.constant 0 : index
    %6 = vector.load %arg4[%c0_5, %c0_6, %c0_7] : memref<1x1x64xf32, #tpu.memory_space<vmem>>, vector<1x1x64xf32>
    %7 = vector.shape_cast %6 : vector<1x1x64xf32> to vector<1x64xf32>
    %8 = vector.broadcast %7 : vector<1x64xf32> to vector<128x64xf32>
    %9 = arith.addf %5, %8 : vector<128x64xf32>
    %10 = arith.truncf %9 : vector<128x64xf32> to vector<128x64xbf16>
    %c0_8 = arith.constant 0 : index
    %c0_9 = arith.constant 0 : index
    %11 = vector.load %arg5[%c0_8, %c0_9] : memref<64x192xbf16, #tpu.memory_space<vmem>>, vector<64x192xbf16>
    %cst = arith.constant dense<0.000000e+00> : vector<128x192xf32>
    %12 = tpu.matmul %10, %11, %cst {dimension_numbers = #tpu.dot_dimension_numbers<[1], [0], [0], [1], [0, 0, 1, 1], [], []>} : vector<128x64xbf16>, vector<64x192xbf16>, vector<128x192xf32> -> vector<128x192xf32>
    %c0_10 = arith.constant 0 : index
    %c0_11 = arith.constant 0 : index
    %13 = vector.load %arg6[%c0_10, %c0_11] : memref<1x192xf32, #tpu.memory_space<vmem>>, vector<1x192xf32>
    %14 = vector.broadcast %13 : vector<1x192xf32> to vector<128x192xf32>
    %15 = arith.addf %12, %14 : vector<128x192xf32>
    %16 = vector.extract_strided_slice %15 {offsets = [0, 0], sizes = [128, 64], strides = [1, 1]} : vector<128x192xf32> to vector<128x64xf32>
    %17 = arith.truncf %16 : vector<128x64xf32> to vector<128x64xbf16>
    %c0_12 = arith.constant 0 : index
    %c0_13 = arith.constant 0 : index
    %c0_14 = arith.constant 0 : index
    %18 = vector.load %arg7[%c0_12, %c0_13, %c0_14] : memref<1x128x64xbf16, #tpu.memory_space<vmem>>, vector<1x128x64xbf16>
    %19 = vector.shape_cast %18 : vector<1x128x64xbf16> to vector<128x64xbf16>
    %20 = vector.shape_cast %17 : vector<128x64xbf16> to vector<1x128x64xbf16>
    tpu.vector_store %arg7[%c0_12, %c0_13, %c0_14], %20 {strides = array<i32>} : memref<1x128x64xbf16, #tpu.memory_space<vmem>>, vector<1x128x64xbf16>,
    %21 = vector.extract_strided_slice %15 {offsets = [0, 64], sizes = [128, 64], strides = [1, 1]} : vector<128x192xf32> to vector<128x64xf32>
    %22 = tpu.transpose %21, [1, 0] : vector<128x64xf32> -> vector<64x128xf32>
    %23 = arith.truncf %22 : vector<64x128xf32> to vector<64x128xbf16>
    %c0_15 = arith.constant 0 : index
    %c0_16 = arith.constant 0 : index
    %c0_17 = arith.constant 0 : index
    %c0_18 = arith.constant 0 : index
    %24 = vector.load %arg8[%c0_15, %c0_16, %c0_17, %c0_18] : memref<1x1x64x128xbf16, #tpu.memory_space<vmem>>, vector<1x1x64x128xbf16>
    %25 = vector.shape_cast %24 : vector<1x1x64x128xbf16> to vector<64x128xbf16>
    %26 = vector.shape_cast %23 : vector<64x128xbf16> to vector<1x1x64x128xbf16>
    tpu.vector_store %arg8[%c0_15, %c0_16, %c0_17, %c0_18], %26 {strides = array<i32>} : memref<1x1x64x128xbf16, #tpu.memory_space<vmem>>, vector<1x1x64x128xbf16>,
    %27 = vector.extract_strided_slice %15 {offsets = [0, 128], sizes = [128, 64], strides = [1, 1]} : vector<128x192xf32> to vector<128x64xf32>
    %28 = arith.truncf %27 : vector<128x64xf32> to vector<128x64xbf16>
    %c0_19 = arith.constant 0 : index
    %c0_20 = arith.constant 0 : index
    %c0_21 = arith.constant 0 : index
    %c0_22 = arith.constant 0 : index
    %29 = vector.load %arg9[%c0_19, %c0_20, %c0_21, %c0_22] : memref<1x1x128x64xbf16, #tpu.memory_space<vmem>>, vector<1x1x128x64xbf16>
    %30 = vector.shape_cast %29 : vector<1x1x128x64xbf16> to vector<128x64xbf16>
    %31 = vector.shape_cast %28 : vector<128x64xbf16> to vector<1x1x128x64xbf16>
    tpu.vector_store %arg9[%c0_19, %c0_20, %c0_21, %c0_22], %31 {strides = array<i32>} : memref<1x1x128x64xbf16, #tpu.memory_space<vmem>>, vector<1x1x128x64xbf16>,
    return
  }
  func.func @transform_0(%arg0: i32, %arg1: i32) -> (i32, i32, i32) {
    %c0_i32 = arith.constant 0 : i32
    %c0_i32_0 = arith.constant 0 : i32
    return %arg0, %arg1, %c0_i32 : i32, i32, i32
  }
  func.func @transform_1(%arg0: i32, %arg1: i32) -> (i32, i32, i32) {
    %c0_i32 = arith.constant 0 : i32
    %c0_i32_0 = arith.constant 0 : i32
    %c0_i32_1 = arith.constant 0 : i32
    return %arg0, %c0_i32, %c0_i32_0 : i32, i32, i32
  }
  func.func @transform_2(%arg0: i32, %arg1: i32) -> (i32, i32, i32) {
    %c0_i32 = arith.constant 0 : i32
    %c0_i32_0 = arith.constant 0 : i32
    %c0_i32_1 = arith.constant 0 : i32
    return %arg0, %c0_i32, %c0_i32_0 : i32, i32, i32
  }
  func.func @transform_3(%arg0: i32, %arg1: i32) -> (i32, i32) {
    %c0_i32 = arith.constant 0 : i32
    %c0_i32_0 = arith.constant 0 : i32
    %c0_i32_1 = arith.constant 0 : i32
    return %c0_i32, %c0_i32_0 : i32, i32
  }
  func.func @transform_4(%arg0: i32, %arg1: i32) -> (i32, i32) {
    %c0_i32 = arith.constant 0 : i32
    %c0_i32_0 = arith.constant 0 : i32
    %c0_i32_1 = arith.constant 0 : i32
    return %c0_i32, %c0_i32_0 : i32, i32
  }
  func.func @transform_5(%arg0: i32, %arg1: i32) -> (i32, i32, i32) {
    %c0_i32 = arith.constant 0 : i32
    %c0_i32_0 = arith.constant 0 : i32
    return %arg0, %arg1, %c0_i32 : i32, i32, i32
  }
  func.func @transform_6(%arg0: i32, %arg1: i32) -> (i32, i32, i32, i32) {
    %c0_i32 = arith.constant 0 : i32
    %c0_i32_0 = arith.constant 0 : i32
    %c0_i32_1 = arith.constant 0 : i32
    return %arg0, %arg1, %c0_i32, %c0_i32_0 : i32, i32, i32, i32
  }
  func.func @transform_7(%arg0: i32, %arg1: i32) -> (i32, i32, i32, i32) {
    %c0_i32 = arith.constant 0 : i32
    %c0_i32_0 = arith.constant 0 : i32
    %c0_i32_1 = arith.constant 0 : i32
    return %arg0, %arg1, %c0_i32, %c0_i32_0 : i32, i32, i32, i32
  }
}

</mosaic_0001>

<bundles_post_ra>
// kernel: tpu_custom_call.1
= control target key start
LH: loop header
LB: loop body
LE: loop exit
PB: predicated region body
PF: predicated region fallthrough
CT: control target
= control target key end

     0   :  { %13 = vsyncpa [#allocation3], 0  ;;  %s1876_s0 = inlined_call_operand.vmem [shape: f32[2,128,64], index: 0, kind: input, shape index: {}]   ;;  %s1877_s1 = inlined_call_operand.vmem [shape: f32[2,1,64], index: 1, kind: input, shape index: {}]   ;;  %s1878_s2 = inlined_call_operand.vmem [shape: f32[2,1,64], index: 2, kind: input, shape index: {}]   ;;  %s1879_s3 = inlined_call_operand.vmem [shape: bf16[64,192], index: 3, kind: input, shape index: {}]   ;;  %s1880_s4 = inlined_call_operand.vmem [shape: f32[1,192], index: 4, kind: input, shape index: {}]   ;;  %s1881_s5 = inlined_call_operand.vmem [shape: bf16[2,128,64], index: 5, kind: output, shape index: {0}]   ;;  %s1882_s6 = inlined_call_operand.hbm [shape: bf16[2,1,64,128], index: 6, kind: output, shape index: {1}]   ;;  %s1883_s7 = inlined_call_operand.vmem [shape: bf16[2,1,128,64], index: 7, kind: output, shape index: {2}]  }
   0x1   :  { %15 = vsyncpa [#allocation3 + $0x1], 0  ;;  %s1505_s24 = smov 0   ;;  %s1507_s25 = smov 0  }
   0x2   :  { %s1509_s26 = smov 0   ;;  %s1511_s27 = smov 0  }
   0x3   :  { %s1513_s28 = smov 0   ;;  %s1515_s29 = smov 0  }
   0x4 LB: > { %s1163_s30 = sadd.s32 4294967295, %s1459_s29   ;;  %s1164_s8 = sadd.s32 4294967294, %s1459_s29   ;;  %s1459_s29 = sphi %s1515_s29, %s21_s29   ;;  %s1455_s28 = sphi %s1513_s28, %s1893_s28   ;;  %s1451_s27 = sphi %s1511_s27, %s1892_s27   ;;  %s1447_s26 = sphi %s1509_s26, %s1891_s26   ;;  %s1443_s25 = sphi %s1507_s25, %s1890_s25   ;;  %s1439_s24 = sphi %s1505_s24, %s1889_s24  }
   0x5   : > { %s33_s9 = sadd.s32 1, %s1455_s28  ;;  %s192_s10 = sadd.s32 1, %s1447_s26 }
   0x6   : > { %p35_p0 = scmp.ge.s32.totalorder %s33_s9, 2  ;;  %p202_p1 = scmp.ne.s32.totalorder %s1447_s26, %s1443_s25 }
   0x7   : > { %p203_p2 = scmp.eq.s32.totalorder %s1163_s30, 1  ;;  %p208_p3 = scmp.ne.s32.totalorder %s1443_s25, %s1439_s24 }
   0x8   : > { %s1895_s9 = smov (%p35_p0, %s33_s9), 0  ;;  %p209_p5 = scmp.eq.s32.totalorder %s1164_s8, 1 }
   0x9   : > { %1885 = sst [smem:[#allocation5_spill]] %s1895_s9  ;;  %p1545_p4 = por %p203_p2, %p202_p1 }
   0xa   : > { %s187_s12 = ssub.s32 %s1455_s28, %s1895_s9  ;;  %p1167_p6 = scmp.ge.s32.totalorder %s1459_s29, 1 }
   0xb   : > { %p190_p7 = scmp.eq.s32.totalorder %s187_s12, 0  ;;  %p1552_p8 = por %p209_p5, %p208_p3 }
   0xc   : > { %p286_p9 = scmp.lt.s32.totalorder %s1459_s29, 3 }
   0xd   : > { %s1558_s14 = scalar_select %p190_p7, %s1447_s26, %s192_s10  }
   0xe   : > { %p287_p10 = pnand %p1167_p6, %p286_p9 }
   0xf   : > { %p347_p11 = scmp.lt.s32.totalorder (!%p287_p10), %s1451_s27, 1  ;;  %s332_s9 = sand.u32 (!%p287_p10), 1, %s1443_s25  }
  0x10   : > { %290 = sbr.rel (%p287_p10) target bundleno = 522 (0x20a), region = 40  ;;  %s1168_s8 = sshll.u32 (!%p287_p10), %s332_s9, 5 }
  0x11   : > { %s1281_s15 = sshll.u32 (!%p287_p10), %s1451_s27, 9 }
  0x12   : > { %s1827_s18 = scalar_lea.hbm (!%p287_p10), %s1882_s6, %s1281_s15 }
  0x15   : > { %v1371_v0 = vld [vmem:[%s1879_s3 + $0x34] ss:$8 sps:$4 sm:$0xff]   ;;  %v1373_v1 = vld [vmem:[%s1879_s3 + $0x30] ss:$8 sps:$4 sm:$0xff]   ;;  %v1461_v2 = vmov 0   ;;  %s1573_s21 = scalar_select %p347_p11, %s1451_s27, 1 }
  0x16   : > { %569 = vmatprep.mubr.bf16.mxu0 %v1461_v2  ;;  %609 = vmatprep.mubr.bf16.mxu1 %v1461_v2  ;;  %v1374_v3 = vld [vmem:[%s1879_s3 + $0x24] ss:$8 sps:$4 sm:$0xff]   ;;  %v1376_v4 = vld [vmem:[%s1879_s3 + $0x20] ss:$8 sps:$4 sm:$0xff]   ;;  %v1377_v5 = vld [vmem:[%s1879_s3 + $0x14] ss:$8 sps:$4 sm:$0xff]  }
  0x17   : > { %545 = vmatprep.subr.bf16.mxu0 %v1371_v0  ;;  %1305 = vmatprep.subr.bf16.mxu1 %v1371_v0  ;;  %s1238_s10 = sshll.u32 %s1573_s21, 7  ;;  %s358_s16 = scalar_lea.vmem %s1877_s1, %s1573_s21  ;;  %v1379_v7 = vld [vmem:[%s1879_s3 + $0x10] ss:$8 sps:$4 sm:$0xff]   ;;  %v1380_v15 = vld [vmem:[%s1879_s3 + $0x4] ss:$8 sps:$4 sm:$0xff]   ;;  %vm512_vm0 = vcmask 523264  }
  0x18   : > { %546 = vmatpush1.bf16.msra.mxu0 %v1373_v1  ;;  %1309 = vmatpush1.bf16.msra.mxu1 %v1373_v1  ;;  %s1589_s19 = scalar_lea.vmem %s1876_s0, %s1238_s10  ;;  %s361_s22 = scalar_lea.vmem %s1878_s2, %s1573_s21  ;;  %v1595_v6 = vld [vmem:[%s358_s16] ss:$0 sm:$0xff]  ;;  %vm714_vm1 = vcmask 519168  }
  0x19   : > { %547 = vmatprep.subr.bf16.mxu0 %v1374_v3  ;;  %1306 = vmatprep.subr.bf16.mxu1 %v1374_v3  ;;  %v382_v8 = vld [vmem:[%s1589_s19] sm:$0xff]  ;;  %v383_v9 = vld [vmem:[%s1589_s19 + $0x8] sm:$0xff]  ;;  %v384_v22 = vld [vmem:[%s1589_s19 + $0x10] sm:$0xff]  ;;  %s1239_s17 = sshll.u32 %s1573_s21, 6  ;;  %s1462_s21 = smov 64  }
  0x1a   : > { %v405_v10 = vmul.f32 %v1595_v6, %v382_v8  ;;  %v406_v11 = vmul.f32 %v1595_v6, %v383_v9  ;;  %v1604_v12 = vld [vmem:[%s361_s22] ss:$0 sm:$0xff]  ;;  %v391_v14 = vld [vmem:[%s1589_s19 + $0x48] sm:$0xff]  ;;  %v385_v23 = vld [vmem:[%s1589_s19 + $0x18] sm:$0xff]  ;;  %v407_v27 = vmul.f32 %v1595_v6, %v384_v22  ;;  %s1683_s20 = scalar_lea.vmem %s1881_s5, %s1239_s17  ;;  %s1691_s30 = scalar_lea.vmem %s1883_s7, %s1239_s17 }
  0x1b   : > { %v390_v13 = vld [vmem:[%s1589_s19 + $0x40] sm:$0xff]  ;;  %v414_v17 = vmul.f32 %v1595_v6, %v391_v14  ;;  %v392_v25 = vld [vmem:[%s1589_s19 + $0x50] sm:$0xff]  ;;  %v393_v26 = vld [vmem:[%s1589_s19 + $0x58] sm:$0xff]  ;;  %v408_v28 = vmul.f32 %v1595_v6, %v385_v23  ;;  %s334_s10 = scalar_lea.vmem [#allocation2], %s1168_s8  ;;  %s1463_s27 = smov [#allocation2]  }
  0x1c   : > { %548 = vmatpush1.bf16.msra.mxu0 %v1376_v4  ;;  %1310 = vmatpush1.bf16.msra.mxu1 %v1376_v4  ;;  %v413_v16 = vmul.f32 %v1595_v6, %v390_v13  ;;  %v428_v18 = vadd.f32 %v1604_v12, %v405_v10  ;;  %v429_v19 = vadd.f32 %v1604_v12, %v406_v11  ;;  %v1382_v24 = vld [vmem:[%s1879_s3] ss:$8 sps:$4 sm:$0xff]   ;;  %v388_v49 = vld [vmem:[%s1589_s19 + $0x30] sm:$0xff]  ;;  %v389_v50 = vld [vmem:[%s1589_s19 + $0x38] sm:$0xff]  ;;  %v462_v4 = vlaneseq  ;;  %s985_s12 = sshll.u32 %s334_s10, 4  ;;  %s1387_s22 = sshll.u32 %s1463_s27, 4  ;;  %s1822_s12 = int_to_ptr.vmem [resolvable:$true] %s985_s12  ;;  %s1388_s22 = int_to_ptr.vmem [resolvable:$false] %s1387_s22 }
  0x1d   : > { %549 = vmatprep.subr.bf16.mxu0 %v1377_v5  ;;  %1307 = vmatprep.subr.bf16.mxu1 %v1377_v5  ;;  %v437_v21 = vadd.f32 %v1604_v12, %v414_v17  ;;  %v415_v31 = vmul.f32 %v1595_v6, %v392_v25  ;;  %v416_v32 = vmul.f32 %v1595_v6, %v393_v26  ;;  %v386_v35 = vld [vmem:[%s1589_s19 + $0x20] sm:$0xff]  ;;  %v387_v36 = vld [vmem:[%s1589_s19 + $0x28] sm:$0xff]  ;;  %v396_v53 = vld [vmem:[%s1589_s19 + $0x70] sm:$0xff]  ;;  %s1389_s23 = scalar_lea.vmem %s1388_s22, 1024  ;;  %p1390_p1 = scmp.lt.s32.totalorder %s1822_s12, %s1388_s22 }
  0x1e   : > { %v436_v20 = vadd.f32 %v1604_v12, %v413_v16  ;;  %v444_v29 = vpack.c.bf16 %v429_v19, %v428_v18  ;;  %v430_v33 = vadd.f32 %v1604_v12, %v407_v27  ;;  %v431_v34 = vadd.f32 %v1604_v12, %v408_v28  ;;  %v394_v39 = vld [vmem:[%s1589_s19 + $0x60] sm:$0xff]  ;;  %v395_v40 = vld [vmem:[%s1589_s19 + $0x68] sm:$0xff]  ;;  %v397_v54 = vld [vmem:[%s1589_s19 + $0x78] sm:$0xff]  ;;  %s1829_s19 = scalar_lea.sflag [#allocation3], %s332_s9 }
  0x1f   : > { %v438_v37 = vadd.f32 %v1604_v12, %v415_v31  ;;  %v439_v38 = vadd.f32 %v1604_v12, %v416_v32  ;;  %v409_v41 = vmul.f32 %v1595_v6, %v386_v35  ;;  %v410_v42 = vmul.f32 %v1595_v6, %v387_v36 }
  0x20   : > { %550 = vmatpush1.bf16.msra.mxu0 %v1379_v7  ;;  %1311 = vmatpush1.bf16.msra.mxu1 %v1379_v7  ;;  %v448_v30 = vpack.c.bf16 %v437_v21, %v436_v20  ;;  %v445_v43 = vpack.c.bf16 %v431_v34, %v430_v33  ;;  %v417_v45 = vmul.f32 %v1595_v6, %v394_v39  ;;  %v463_v5 = vshrl.u32 %v462_v4, 7  ;;  %v460_v7 = vld [vmem:[%s1880_s4] sm:$0x3] }
  0x21   : > { %551 = vmatprep.subr.bf16.mxu0 %v1380_v15  ;;  %1308 = vmatprep.subr.bf16.mxu1 %v1380_v15  ;;  %v449_v44 = vpack.c.bf16 %v439_v38, %v438_v37  ;;  %v418_v46 = vmul.f32 %v1595_v6, %v395_v40  ;;  %v432_v47 = vadd.f32 %v1604_v12, %v409_v41 }
  0x22   : > { %v433_v48 = vadd.f32 %v1604_v12, %v410_v42  ;;  %v440_v51 = vadd.f32 %v1604_v12, %v417_v45  ;;  %v411_v55 = vmul.f32 %v1595_v6, %v388_v49  ;;  %v412_v56 = vmul.f32 %v1595_v6, %v389_v50 }
  0x23   : > { %v441_v52 = vadd.f32 %v1604_v12, %v418_v46  ;;  %v419_v59 = vmul.f32 %v1595_v6, %v396_v53  ;;  %v420_v60 = vmul.f32 %v1595_v6, %v397_v54  ;;  %v464_v6 = vsub.s32 0, %v463_v5 }
  0x24   : > { %552 = vmatpush1.bf16.msra.mxu0 %v1382_v24  ;;  %1312 = vmatpush1.bf16.msra.mxu1 %v1382_v24  ;;  %v446_v57 = vpack.c.bf16 %v433_v48, %v432_v47  ;;  %v434_v61 = vadd.f32 %v1604_v12, %v411_v55  ;;  %v435_v62 = vadd.f32 %v1604_v12, %v412_v56  ;;  %v468_v8 = vsub.s32 1, %v463_v5 }
  0x25   : > { %v450_v58 = vpack.c.bf16 %v441_v52, %v440_v51  ;;  %v442_v63 = vadd.f32 %v1604_v12, %v419_v59  ;;  %v443_v0 = vadd.f32 %v1604_v12, %v420_v60  ;;  %v1673_v9 = vrot.slane %v460_v7, %v464_v6 }
  0x26   : > { %v447_v1 = vpack.c.bf16 %v435_v62, %v434_v61  ;;  %v1676_v10 = vrot.slane %v460_v7, %v468_v8 }
  0x27   : > { %1185 = vmatmul.mubr.msk.bf16.vlgmr.msra.gmra.mxu0 %vm512_vm0, %v444_v29  ;;  %1189 = vmatmul.mubr.msk.bf16.vlgmr.msra.gmra.mxu1 %vm512_vm0, %v448_v30  ;;  %v451_v3 = vpack.c.bf16 %v443_v0, %v442_v63 }
  0x28   : > { %579 = vmatprep.mubr.bf16.mxu0 %v1461_v2  ;;  %619 = vmatprep.mubr.bf16.mxu1 %v1461_v2 }
  0x2f   : > { %1186 = vmatmul.mubr.msk.bf16.gmra.mxu0 %vm512_vm0, %v445_v43  ;;  %1190 = vmatmul.mubr.msk.bf16.gmra.mxu1 %vm512_vm0, %v449_v44 }
  0x30   : > { %589 = vmatprep.mubr.bf16.mxu0 %v1461_v2  ;;  %629 = vmatprep.mubr.bf16.mxu1 %v1461_v2 }
  0x37   : > { %1187 = vmatmul.mubr.msk.bf16.gmra.mxu0 %vm512_vm0, %v446_v57  ;;  %1191 = vmatmul.mubr.msk.bf16.gmra.mxu1 %vm512_vm0, %v450_v58 }
  0x38   : > { %599 = vmatprep.mubr.bf16.mxu0 %v1461_v2  ;;  %639 = vmatprep.mubr.bf16.mxu1 %v1461_v2 }
  0x3f   : > { %1188 = vmatmul.mubr.msk.bf16.gmra.mxu0 %vm512_vm0, %v447_v1  ;;  %1192 = vmatmul.mubr.msk.bf16.gmra.mxu1 %vm512_vm0, %v451_v3 }
  0xe7   : > { %v571_v2 = vpop.f32.mrf.mxu0  ;;  %v611_v11 = vpop.f32.mrf.mxu1 }
  0xe8   : > { %v572_v12 = vadd.f32 %v571_v2, %v1673_v9  ;;  %v612_v13 = vadd.f32 %v611_v11, %v1673_v9 }
  0xe9   : > { %v573_v14 = vpop.f32.mrf.mxu0  ;;  %v613_v15 = vpop.f32.mrf.mxu1 }
  0xea   : > { %v1241_v16 = vpack.c.bf16 %v572_v12, %v572_v12  ;;  %v1249_v17 = vpack.c.bf16 %v612_v13, %v612_v13  ;;  %v574_v18 = vadd.f32 %v573_v14, %v1676_v10  ;;  %v614_v19 = vadd.f32 %v613_v15, %v1676_v10  ;;  %747 = vrot.lane.b32.xlu0 %v572_v12, %s1462_s21 }
  0xeb   : > { %v575_v20 = vpop.f32.mrf.mxu0  ;;  %v615_v21 = vpop.f32.mrf.mxu1 }
  0xec   : > { %715 = vst.msk [vmem:[%s1683_s20] sm:$0xf] %vm714_vm1, %v1241_v16  ;;  %723 = vst.msk [vmem:[%s1683_s20 + $0x20] sm:$0xf] %vm714_vm1, %v1249_v17  ;;  %v1265_v22 = vpack.c.bf16 %v574_v18, %v574_v18  ;;  %v1273_v23 = vpack.c.bf16 %v614_v19, %v614_v19  ;;  %v576_v24 = vadd.f32 %v575_v20, %v1673_v9 }
  0xed   : > { %v1699_v25 = vadd.f32 %v615_v21, %v1673_v9  ;;  %v577_v26 = vpop.f32.mrf.mxu0  ;;  %v617_v27 = vpop.f32.mrf.mxu1 }
  0xee   : > { %931 = vst.msk [vmem:[%s1691_s30] sm:$0xf] %vm714_vm1, %v1265_v22  ;;  %939 = vst.msk [vmem:[%s1691_s30 + $0x20] sm:$0xf] %vm714_vm1, %v1273_v23  ;;  %v1242_v28 = vpack.c.bf16 %v576_v24, %v576_v24  ;;  %v578_v30 = vadd.f32 %v577_v26, %v1676_v10  ;;  %v618_v31 = vadd.f32 %v617_v27, %v1676_v10  ;;  %763 = vrot.lane.b32.xlu0 %v612_v13, %s1462_s21 }
  0xef   : > { %v1250_v29 = vpack.c.bf16 %v1699_v25, %v1699_v25  ;;  %v581_v32 = vpop.f32.mrf.mxu0  ;;  %v621_v33 = vpop.f32.mrf.mxu1 }
  0xf0   : > { %716 = vst.msk [vmem:[%s1683_s20 + $0x4] sm:$0xf] %vm714_vm1, %v1242_v28  ;;  %v1266_v34 = vpack.c.bf16 %v578_v30, %v578_v30  ;;  %v1274_v35 = vpack.c.bf16 %v618_v31, %v618_v31  ;;  %v582_v36 = vadd.f32 %v581_v32, %v1673_v9  ;;  %v1716_v37 = vadd.f32 %v621_v33, %v1673_v9 }
  0xf1   : > { %724 = vst.msk [vmem:[%s1683_s20 + $0x24] sm:$0xf] %vm714_vm1, %v1250_v29  ;;  %v583_v38 = vpop.f32.mrf.mxu0  ;;  %v623_v39 = vpop.f32.mrf.mxu1 }
  0xf2   : > { %932 = vst.msk [vmem:[%s1691_s30 + $0x4] sm:$0xf] %vm714_vm1, %v1266_v34  ;;  %940 = vst.msk [vmem:[%s1691_s30 + $0x24] sm:$0xf] %vm714_vm1, %v1274_v35  ;;  %v1243_v40 = vpack.c.bf16 %v582_v36, %v582_v36  ;;  %v584_v41 = vadd.f32 %v583_v38, %v1676_v10  ;;  %751 = vrot.lane.b32.xlu1 %v582_v36, %s1462_s21  ;;  %749 = vrot.lane.b32.xlu0 %v576_v24, %s1462_s21 }
  0xf3   : > { %v1251_v42 = vpack.c.bf16 %v1716_v37, %v1716_v37  ;;  %v585_v43 = vpop.f32.mrf.mxu0  ;;  %v624_v44 = vadd.f32 %v623_v39, %v1676_v10  ;;  %v625_v45 = vpop.f32.mrf.mxu1 }
  0xf4   : > { %717 = vst.msk [vmem:[%s1683_s20 + $0x8] sm:$0xf] %vm714_vm1, %v1243_v40  ;;  %v1267_v46 = vpack.c.bf16 %v584_v41, %v584_v41  ;;  %v586_v47 = vadd.f32 %v585_v43, %v1673_v9  ;;  %v1734_v48 = vadd.f32 %v625_v45, %v1673_v9 }
  0xf5   : > { %725 = vst.msk [vmem:[%s1683_s20 + $0x28] sm:$0xf] %vm714_vm1, %v1251_v42  ;;  %v587_v49 = vpop.f32.mrf.mxu0  ;;  %v1275_v50 = vpack.c.bf16 %v624_v44, %v624_v44  ;;  %v627_v51 = vpop.f32.mrf.mxu1 }
  0xf6   : > { %933 = vst.msk [vmem:[%s1691_s30 + $0x8] sm:$0xf] %vm714_vm1, %v1267_v46  ;;  %v1244_v52 = vpack.c.bf16 %v586_v47, %v586_v47  ;;  %v588_v53 = vadd.f32 %v587_v49, %v1676_v10  ;;  %753 = vrot.lane.b32.xlu1 %v586_v47, %s1462_s21  ;;  %v1252_v54 = vpack.c.bf16 %v1734_v48, %v1734_v48 }
  0xf7   : > { %v628_v55 = vadd.f32 %v627_v51, %v1676_v10  ;;  %v591_v56 = vpop.f32.mrf.mxu0  ;;  %941 = vst.msk [vmem:[%s1691_s30 + $0x28] sm:$0xf] %vm714_vm1, %v1275_v50  ;;  %v631_v57 = vpop.f32.mrf.mxu1 }
  0xf8   : > { %718 = vst.msk [vmem:[%s1683_s20 + $0xc] sm:$0xf] %vm714_vm1, %v1244_v52  ;;  %v1268_v58 = vpack.c.bf16 %v588_v53, %v588_v53  ;;  %v592_v59 = vadd.f32 %v591_v56, %v1673_v9  ;;  %726 = vst.msk [vmem:[%s1683_s20 + $0x2c] sm:$0xf] %vm714_vm1, %v1252_v54  ;;  %v1751_v61 = vadd.f32 %v631_v57, %v1673_v9 }
  0xf9   : > { %v1276_v60 = vpack.c.bf16 %v628_v55, %v628_v55  ;;  %v593_v62 = vpop.f32.mrf.mxu0  ;;  %v633_v63 = vpop.f32.mrf.mxu1 }
  0xfa   : > { %934 = vst.msk [vmem:[%s1691_s30 + $0xc] sm:$0xf] %vm714_vm1, %v1268_v58  ;;  %v1245_v0 = vpack.c.bf16 %v592_v59, %v592_v59  ;;  %v594_v1 = vadd.f32 %v593_v62, %v1676_v10  ;;  %755 = vrot.lane.b32.xlu0 %v592_v59, %s1462_s21  ;;  %v1253_v3 = vpack.c.bf16 %v1751_v61, %v1751_v61 }
  0xfb   : > { %942 = vst.msk [vmem:[%s1691_s30 + $0x2c] sm:$0xf] %vm714_vm1, %v1276_v60  ;;  %v634_v4 = vadd.f32 %v633_v63, %v1676_v10  ;;  %v595_v5 = vpop.f32.mrf.mxu0  ;;  %v635_v6 = vpop.f32.mrf.mxu1 }
  0xfc   : > { %719 = vst.msk [vmem:[%s1683_s20 + $0x10] sm:$0xf] %vm714_vm1, %v1245_v0  ;;  %v1269_v7 = vpack.c.bf16 %v594_v1, %v594_v1  ;;  %v596_v8 = vadd.f32 %v595_v5, %v1673_v9  ;;  %727 = vst.msk [vmem:[%s1683_s20 + $0x30] sm:$0xf] %vm714_vm1, %v1253_v3  ;;  %v636_v11 = vadd.f32 %v635_v6, %v1673_v9 }
  0xfd   : > { %v1277_v2 = vpack.c.bf16 %v634_v4, %v634_v4  ;;  %v597_v12 = vpop.f32.mrf.mxu0  ;;  %v637_v13 = vpop.f32.mrf.mxu1 }
  0xfe   : > { %935 = vst.msk [vmem:[%s1691_s30 + $0x10] sm:$0xf] %vm714_vm1, %v1269_v7  ;;  %v1246_v14 = vpack.c.bf16 %v596_v8, %v596_v8  ;;  %v598_v15 = vadd.f32 %v597_v12, %v1676_v10  ;;  %757 = vrot.lane.b32.xlu1 %v596_v8, %s1462_s21  ;;  %v1254_v16 = vpack.c.bf16 %v636_v11, %v636_v11 }
  0xff   : > { %943 = vst.msk [vmem:[%s1691_s30 + $0x30] sm:$0xf] %vm714_vm1, %v1277_v2  ;;  %v638_v17 = vadd.f32 %v637_v13, %v1676_v10  ;;  %v601_v18 = vpop.f32.mrf.mxu0  ;;  %v641_v19 = vpop.f32.mrf.mxu1 }
 0x100   : > { %720 = vst.msk [vmem:[%s1683_s20 + $0x14] sm:$0xf] %vm714_vm1, %v1246_v14  ;;  %v1270_v20 = vpack.c.bf16 %v598_v15, %v598_v15  ;;  %v602_v21 = vadd.f32 %v601_v18, %v1673_v9  ;;  %728 = vst.msk [vmem:[%s1683_s20 + $0x34] sm:$0xf] %vm714_vm1, %v1254_v16  ;;  %v642_v23 = vadd.f32 %v641_v19, %v1673_v9 }
 0x101   : > { %v1278_v22 = vpack.c.bf16 %v638_v17, %v638_v17  ;;  %v603_v24 = vpop.f32.mrf.mxu0  ;;  %v643_v26 = vpop.f32.mrf.mxu1 }
 0x102   : > { %936 = vst.msk [vmem:[%s1691_s30 + $0x14] sm:$0xf] %vm714_vm1, %v1270_v20  ;;  %v1247_v27 = vpack.c.bf16 %v602_v21, %v602_v21  ;;  %v604_v28 = vadd.f32 %v603_v24, %v1676_v10  ;;  %759 = vrot.lane.b32.xlu0 %v602_v21, %s1462_s21  ;;  %v1255_v29 = vpack.c.bf16 %v642_v23, %v642_v23 }
 0x103   : > { %944 = vst.msk [vmem:[%s1691_s30 + $0x34] sm:$0xf] %vm714_vm1, %v1278_v22  ;;  %v644_v30 = vadd.f32 %v643_v26, %v1676_v10  ;;  %v605_v31 = vpop.f32.mrf.mxu0  ;;  %v645_v32 = vpop.f32.mrf.mxu1 }
 0x104   : > { %721 = vst.msk [vmem:[%s1683_s20 + $0x18] sm:$0xf] %vm714_vm1, %v1247_v27  ;;  %v1271_v33 = vpack.c.bf16 %v604_v28, %v604_v28  ;;  %v606_v34 = vadd.f32 %v605_v31, %v1673_v9  ;;  %729 = vst.msk [vmem:[%s1683_s20 + $0x38] sm:$0xf] %vm714_vm1, %v1255_v29  ;;  %v646_v36 = vadd.f32 %v645_v32, %v1673_v9 }
 0x105   : > { %v1279_v35 = vpack.c.bf16 %v644_v30, %v644_v30  ;;  %v607_v38 = vpop.f32.mrf.mxu0  ;;  %v647_v39 = vpop.f32.mrf.mxu1 }
 0x106   : > { %937 = vst.msk [vmem:[%s1691_s30 + $0x18] sm:$0xf] %vm714_vm1, %v1271_v33  ;;  %v1248_v40 = vpack.c.bf16 %v606_v34, %v606_v34  ;;  %v608_v41 = vadd.f32 %v607_v38, %v1676_v10  ;;  %761 = vrot.lane.b32.xlu1 %v606_v34, %s1462_s21  ;;  %767 = vrot.lane.b32.xlu0 %v1716_v37, %s1462_s21 }
 0x107   : > { %945 = vst.msk [vmem:[%s1691_s30 + $0x38] sm:$0xf] %vm714_vm1, %v1279_v35  ;;  %v1256_v42 = vpack.c.bf16 %v646_v36, %v646_v36  ;;  %v648_v43 = vadd.f32 %v647_v39, %v1676_v10 }
 0x108   : > { %722 = vst.msk [vmem:[%s1683_s20 + $0x1c] sm:$0xf] %vm714_vm1, %v1248_v40  ;;  %v1272_v9 = vpack.c.bf16 %v608_v41, %v608_v41 }
 0x109   : > { %730 = vst.msk [vmem:[%s1683_s20 + $0x3c] sm:$0xf] %vm714_vm1, %v1256_v42  ;;  %v1280_v44 = vpack.c.bf16 %v648_v43, %v648_v43  ;;  %s1383_s20 = scalar_lea.vmem %s1822_s12, 512 }
 0x10a   : > { %938 = vst.msk [vmem:[%s1691_s30 + $0x1c] sm:$0xf] %vm714_vm1, %v1272_v9  ;;  %765 = vrot.lane.b32.xlu1 %v1699_v25, %s1462_s21  ;;  %771 = vrot.lane.b32.xlu0 %v1751_v61, %s1462_s21  ;;  %p1384_p12 = scmp.ne.s32.totalorder %s1822_s12, %s1383_s20  ;;  %p1391_p2 = scmp.lt.s32.totalorder %s1389_s23, %s1383_s20 }
 0x10b   : > { %946 = vst.msk [vmem:[%s1691_s30 + $0x3c] sm:$0xf] %vm714_vm1, %v1280_v44 }
 0x10c   : > { %p1385_p13 = pnand %p1384_p12, %p1545_p4  ;;  %p1392_p3 = por %p1391_p2, %p1390_p1 }
 0x10e   : > { %769 = vrot.lane.b32.xlu1 %v1734_v48, %s1462_s21  ;;  %775 = vrot.lane.b32.xlu0 %v642_v23, %s1462_s21  ;;  %p1386_p0 = pneg %p1385_p13 }
 0x110   : > { %p1393_p5 = pnand %p1392_p3, %p1386_p0 }
 0x112   : > { %773 = vrot.lane.b32.xlu1 %v636_v11, %s1462_s21 }
 0x116   : > { %777 = vrot.lane.b32.xlu1 %v646_v36, %s1462_s21 }
 0x15c   : > { %v748_v10 = vpop.permute.xlu0 %747 }
 0x15d   : > { %795 = vxpose.xlu0.b32.start [1/16] (narrow) %v748_v10, 64 }
 0x160   : > { %v764_v37 = vpop.permute.xlu0 %763 }
 0x164   : > { %v750_v45 = vpop.permute.xlu0 %749  ;;  %v752_v25 = vpop.permute.xlu1 %751 }
 0x165   : > { %796 = vxpose.xlu0.b32.cont [2/16] (narrow) %v750_v45, 64 }
 0x168   : > { %v754_v46 = vpop.permute.xlu1 %753 }
 0x169   : > { %797 = vxpose.xlu0.b32.cont [3/16] (narrow) %v752_v25, 64 }
 0x16c   : > { %v756_v47 = vpop.permute.xlu0 %755 }
 0x16d   : > { %798 = vxpose.xlu0.b32.cont [4/16] (narrow) %v754_v46, 64 }
 0x170   : > { %v758_v49 = vpop.permute.xlu1 %757 }
 0x171   : > { %799 = vxpose.xlu0.b32.cont [5/16] (narrow) %v756_v47, 64 }
 0x174   : > { %v760_v48 = vpop.permute.xlu0 %759 }
 0x175   : > { %800 = vxpose.xlu0.b32.cont [6/16] (narrow) %v758_v49, 64 }
 0x178   : > { %v762_v50 = vpop.permute.xlu1 %761  ;;  %v768_v52 = vpop.permute.xlu0 %767 }
 0x179   : > { %801 = vxpose.xlu0.b32.cont [7/16] (narrow) %v760_v48, 64 }
 0x17c   : > { %v766_v51 = vpop.permute.xlu1 %765  ;;  %v772_v54 = vpop.permute.xlu0 %771 }
 0x17d   : > { %802 = vxpose.xlu0.b32.cont [8/16] (narrow) %v762_v50, 64 }
 0x180   : > { %v770_v53 = vpop.permute.xlu1 %769  ;;  %v776_v56 = vpop.permute.xlu0 %775 }
 0x181   : > { %803 = vxpose.xlu0.b32.cont [9/16] (narrow) %v764_v37, 64 }
 0x184   : > { %v774_v55 = vpop.permute.xlu1 %773 }
 0x185   : > { %804 = vxpose.xlu0.b32.cont [10/16] (narrow) %v766_v51, 64 }
 0x188   : > { %v778_v57 = vpop.permute.xlu1 %777 }
 0x189   : > { %805 = vxpose.xlu0.b32.cont [11/16] (narrow) %v768_v52, 64 }
 0x18d   : > { %806 = vxpose.xlu0.b32.cont [12/16] (narrow) %v770_v53, 64 }
 0x191   : > { %807 = vxpose.xlu0.b32.cont [13/16] (narrow) %v772_v54, 64 }
 0x195   : > { %808 = vxpose.xlu0.b32.cont [14/16] (narrow) %v774_v55, 64 }
 0x199   : > { %809 = vxpose.xlu0.b32.cont [15/16] (narrow) %v776_v56, 64 }
 0x19d   : > { %810 = vxpose.xlu0.b32.end [16/16] (narrow) %v778_v57, 64 }
 0x1dd   : > { %v811_v58 = vpop.trf.xlu0 }
 0x1e1   : > { %v812_v59 = vpop.trf.xlu0 }
 0x1e2   : > { %v1285_v60 = vpack.c.bf16 %v812_v59, %v811_v58 }
 0x1e4   : > { %1286 = vst [vmem:[%s334_s10] sm:$0xff] %v1285_v60  }
 0x1e5   : > { %v813_v61 = vpop.trf.xlu0 }
 0x1e9   : > { %v814_v62 = vpop.trf.xlu0 }
 0x1ea   : > { %v1290_v63 = vpack.c.bf16 %v814_v62, %v813_v61 }
 0x1ec   : > { %1302 = vst [vmem:[%s334_s10 + $0x8] sm:$0xff] %v1290_v63  }
 0x1ed   : > { %v815_v0 = vpop.trf.xlu0 }
 0x1f1   : > { %v816_v1 = vpop.trf.xlu0 }
 0x1f2   : > { %v1295_v3 = vpack.c.bf16 %v816_v1, %v815_v0 }
 0x1f4   : > { %1303 = vst [vmem:[%s334_s10 + $0x10] sm:$0xff] %v1295_v3  }
 0x1f5   : > { %v817_v4 = vpop.trf.xlu0 }
 0x1f9   : > { %v818_v5 = vpop.trf.xlu0 }
 0x1fa   : > { %v1300_v6 = vpack.c.bf16 %v818_v5, %v817_v4 }
 0x1fc   : > { %1304 = vst [vmem:[%s334_s10 + $0x18] sm:$0xff] %v1300_v6  }
 0x1fd   : > { %1396 = shalt.err (!%p1393_p5)
}
 0x1fe   : > { %s1397_s30 = scalar_lea.hbm %s1827_s18, 512  ;;  %s1401_s10 = scalar_lea.hbm %s1882_s6, 1024 }
 0x1ff   : > { %p1398_p6 = scmp.ne.s32.totalorder %s1827_s18, %s1397_s30  ;;  %p1402_p10 = scmp.lt.s32.totalorder %s1827_s18, %s1882_s6 }
 0x200   : > { %p1403_p11 = scmp.lt.s32.totalorder %s1401_s10, %s1397_s30 }
 0x201   : > { %p1399_p7 = pnand %p1398_p6, %p1545_p4 }
 0x202   : > { %p1404_p12 = por %p1403_p11, %p1402_p10 }
 0x203   : > { %p1400_p9 = pneg %p1399_p7 }
 0x205   : > { %p1405_p13 = pnand %p1404_p12, %p1400_p9 }
 0x207   : > { %1408 = shalt.err (!%p1405_p13)
}
 0x208   : > { %s1464_s17 = smov 4  }
 0x209   : > { %1313 = dma.vmem_to_hbm [thread:$0]  (%p1545_p4), %s1822_s12, 512, %s1827_s18, %s1829_s19, %s1462_s21, %s1462_s21, %s1464_s17  }
 0x20a PF: > { %p1319_p0 = scmp.ge.s32.totalorder %s1459_s29, 2  ;;  %s1015_s20 = sand.u32 1, %s1439_s24  }
 0x20b   : > { %s1016_s27 = scalar_lea.sflag [#allocation3], %s1015_s20 }
 0x20c   : > { %p1316_p1 = pnand %p1319_p0, %p1552_p8 }
 0x20e   : > { %p1317_p2 = pneg %p1316_p1 }
 0x210   : > { %1434 = dma.done.wait (%p1317_p2), %s1016_s27, 512  }
 0x211   : > { %1436 = vsyncadd (%p1317_p2), %s1016_s27, 4294966784  ;;  %s21_s29 = sadd.s32 1, %s1459_s29   ;;  %s1888_s11 = sld [smem:[#allocation5_spill]] }
 0x212   : > { %p18_p3 = scmp.ge.s32.totalorder %s21_s29, 4   ;;  %s1889_s24 = smov %s1443_s25 }
 0x213   : > { %s1890_s25 = smov %s1447_s26  ;;  %s1891_s26 = smov %s1558_s14 }
 0x214   : > { %s1892_s27 = smov %s1455_s28  ;;  %20 = sbr.rel (!%p18_p3) target bundleno = 4 (0x4), region = 105 }
 0x217   : > { %s1893_s28 = smov %s1888_s11 }
 0x219   :  { %1033 = vsyncpa [#allocation3], 1 }
 0x21a   :  { %1035 = vsyncpa [#allocation3 + $0x1], 1 }

</bundles_post_ra>
